<compile_context>
chip_gen: v6e
topology: v6e:2x2x1
jax: 0.10.0
libtpu: 0.0.40
codegen_flags: <defaults>
</compile_context>

<pallas_src>
import math

import jax
import jax.numpy as jnp
from jax.experimental import pallas as pl
from jax.experimental.pallas import tpu as pltpu


def _round_up(x, m):
    return ((x + m - 1) // m) * m


# ---------------------------------------------------------------------------
# Kernel 1: row-normalize and fold sqrt(1/temperature) into the rows:
#   (x_i/(||x_i|| sqrt(T))) . (x_j/(||x_j|| sqrt(T))) == (xn_i . xn_j) / T
# ---------------------------------------------------------------------------
def _make_normalize_kernel(scale):
    # `scale` is a Python float -> becomes a jaxpr literal (no captured-constant error).
    def kernel(x_ref, o_ref):
        x = x_ref[...]                                        # (TM, D) f32
        sq = jnp.sum(x * x, axis=1, keepdims=True)            # (TM, 1)
        # rsqrt lowers to the EUP (its own VLIW slot); matches F.normalize eps=1e-12.
        inv = scale * jax.lax.rsqrt(jnp.maximum(sq, 1e-24))
        o_ref[...] = (x * inv).astype(o_ref.dtype)
    return kernel


# ---------------------------------------------------------------------------
# Kernel 2: tiled similarity + per-row pos/total accumulation (static shift).
# ---------------------------------------------------------------------------
def _make_rowloss_kernel(inv_t, precision):
    # inv_t: Python float (1/temperature); precision: lax.Precision or None.
    def kernel(lhs_ref, rhs_ref, row_lab_ref, col_lab_ref, col_bias_ref,
               loss_ref, pos_acc, tot_acc):
        j = pl.program_id(1)
        last_j = pl.num_programs(1) - 1

        @pl.when(j == 0)
        def _init():
            pos_acc[...] = jnp.zeros_like(pos_acc)
            tot_acc[...] = jnp.zeros_like(tot_acc)

        # (TM, D) x (TN, D) contracting dim 1 of both -> (TM, TN) on the MXU.
        sim = jax.lax.dot_general(
            lhs_ref[...], rhs_ref[...],
            dimension_numbers=(((1,), (1,)), ((), ())),
            preferred_element_type=jnp.float32,
            precision=precision)

        eq = row_lab_ref[...] == col_lab_ref[...]     # (TM,1)==(1,TN) -> (TM,TN) bool

        def accum(s):
            # Static max shift: rows carry sqrt(1/T) and are unit-norm, so the
            # diagonal sim[i,i] == 1/T is the exact row max; exp(s - 1/T) <= 1,
            # no overflow for any temperature, and the shift cancels in the loss.
            e = jnp.exp(s - inv_t)                    # (TM, TN)
            pe = jnp.where(eq, e, 0.0)
            tn = e.shape[1]
            t_add = e[:, 0:128]
            p_add = pe[:, 0:128]
            for k in range(1, tn // 128):             # static unroll: pure VPU adds
                t_add = t_add + e[:, k * 128:(k + 1) * 128]
                p_add = p_add + pe[:, k * 128:(k + 1) * 128]
            tot_acc[...] += t_add                     # (TM, 128) full-width stores
            pos_acc[...] += p_add

        @pl.when(j != last_j)
        def _interior():
            accum(sim)

        @pl.when(j == last_j)
        def _final():
            # Padded columns only live in the last column tile -> add bias here only.
            accum(sim + col_bias_ref[...])
            # Single cross-lane reduce per row block (XLU), in the epilogue only.
            tot = jnp.sum(tot_acc[...], axis=1, keepdims=True)   # (TM, 1)
            pos = jnp.sum(pos_acc[...], axis=1, keepdims=True)
            # loss = log(tot) - log(pos) = -log(pos / (pos + neg)); the static shift
            # cancels. max() guards padded rows (pos could be 0); they are sliced
            # off before the mean in the wrapper.
            loss_ref[...] = jnp.log(tot) - jnp.log(jnp.maximum(pos, 1e-30))
    return kernel


# ---------------------------------------------------------------------------
# Tile selection: biggest square tile (multiple of 128) whose double-buffered
# lhs+rhs blocks fit a 32 MiB budget, while keeping >= 2 row blocks (v7x megacore).
# ---------------------------------------------------------------------------
def _pick_tile(B, D, itemsize):
    budget = 32 * 1024 * 1024
    for t in (512, 256):
        if B <= t:                                   # keep >= 2 row blocks / limit padding
            continue
        if 2 * (2 * t * D) * itemsize <= budget:     # double-buffered lhs + rhs
            return t
    return 128


# ---------------------------------------------------------------------------
# Wrapper
# ---------------------------------------------------------------------------
def contrastive_loss(embeddings, labels, temperature=0.07, use_bf16_matmul=None):
    """embeddings: (B, D) float, labels: (B,) int. Returns scalar f32 mean loss.

    use_bf16_matmul=None -> auto (bf16 MXU operands when D >= 256; ~1e-2 logit
    error, fine for a training loss but not for 1e-5-tolerance comparisons).
    """
    B, D = embeddings.shape
    if use_bf16_matmul is None:
        use_bf16_matmul = D >= 256
    compute_dtype = jnp.bfloat16 if use_bf16_matmul else jnp.float32
    itemsize = 2 if use_bf16_matmul else 4
    precision = None if use_bf16_matmul else jax.lax.Precision.HIGHEST

    TM = TN = _pick_tile(B, D, itemsize)
    Bp = _round_up(B, TM)
    pad = Bp - B

    x = embeddings.astype(jnp.float32)
    lab = labels.astype(jnp.int32)
    if pad:
        x = jnp.pad(x, ((0, pad), (0, 0)))
        lab = jnp.pad(lab, (0, pad))
    row_lab = lab.reshape(Bp, 1)
    col_lab = lab.reshape(1, Bp)
    # -1e30 additive bias on padded columns -> exp == 0 (finite "-inf").
    col_bias = jnp.where(jnp.arange(Bp) < B, 0.0, -1e30).astype(jnp.float32)
    col_bias = col_bias.reshape(1, Bp)

    scale = float(1.0 / math.sqrt(temperature))   # folded into both operands -> 1/T
    inv_t = float(1.0 / temperature)

    # ---- pass 1: normalize + temperature fold (once, O(B*D)) ----
    TM1 = 128                                     # small row tile; pass 1 is tiny
    xs = pl.pallas_call(
        _make_normalize_kernel(scale),
        out_shape=jax.ShapeDtypeStruct((Bp, D), compute_dtype),
        grid=(Bp // TM1,),
        in_specs=[pl.BlockSpec((TM1, D), lambda i: (i, 0))],
        out_specs=pl.BlockSpec((TM1, D), lambda i: (i, 0)),
        compiler_params=pltpu.CompilerParams(
            dimension_semantics=("parallel",)),
    )(x)

    # ---- pass 2: tiled sim + per-row reduction (xs fed as both operands) ----
    blocks_bytes = 2 * (TM * D + TN * D) * itemsize        # double-buffered lhs+rhs
    scratch_bytes = 2 * TM * 128 * 4
    vmem_limit = int(min(max(blocks_bytes + scratch_bytes + (8 << 20), 32 << 20),
                         48 << 20))                        # <= 48 MiB: safe on v7x

    per_row = pl.pallas_call(
        _make_rowloss_kernel(inv_t, precision),
        out_shape=jax.ShapeDtypeStruct((Bp, 1), jnp.float32),
        grid_spec=pltpu.PrefetchScalarGridSpec(
            num_scalar_prefetch=0,
            grid=(Bp // TM, Bp // TN),
            in_specs=[
                pl.BlockSpec((TM, D), lambda i, j: (i, 0)),   # lhs row block
                pl.BlockSpec((TN, D), lambda i, j: (j, 0)),   # rhs row block (QK^T style)
                pl.BlockSpec((TM, 1), lambda i, j: (i, 0)),   # row labels
                pl.BlockSpec((1, TN), lambda i, j: (0, j)),   # col labels
                pl.BlockSpec((1, TN), lambda i, j: (0, j)),   # col validity bias
            ],
            out_specs=pl.BlockSpec((TM, 1), lambda i, j: (i, 0)),
            scratch_shapes=[
                pltpu.VMEM((TM, 128), jnp.float32),           # pos accumulator
                pltpu.VMEM((TM, 128), jnp.float32),           # tot accumulator
            ],
        ),
        compiler_params=pltpu.CompilerParams(
            dimension_semantics=("parallel", "arbitrary"),
            vmem_limit_bytes=vmem_limit),
    )(xs, xs, row_lab, col_lab, col_bias)

    return jnp.mean(per_row[:B, 0])


# ---------------------------------------------------------------------------
# Pure-JAX reference (mirrors the PyTorch module)
# ---------------------------------------------------------------------------
def _reference(embeddings, labels, temperature=0.07):
    x = embeddings.astype(jnp.float32)
    xn = x / jnp.maximum(jnp.linalg.norm(x, axis=1, keepdims=True), 1e-12)
    sim = jnp.matmul(xn, xn.T, precision=jax.lax.Precision.HIGHEST) / temperature
    mask = (labels[:, None] == labels[None, :]).astype(jnp.float32)
    e = jnp.exp(sim)
    pos = jnp.sum(e * mask, axis=1)
    neg = jnp.sum(e * (1.0 - mask), axis=1)
    return jnp.mean(-jnp.log(pos / (pos + neg)))


if __name__ == "__main__":
    key = jax.random.PRNGKey(0)
    k1, k2, k3, k4 = jax.random.split(key, 4)

    # Case 1: default temperature.
    B, D = 8, 32
    emb = jax.random.normal(k1, (B, D), dtype=jnp.float32)
    lab = jax.random.randint(k2, (B,), 0, 3, dtype=jnp.int32)
    loss = contrastive_loss(emb, lab, temperature=0.07)
    jax.block_until_ready(loss)
    ref = _reference(emb, lab, 0.07)
    assert jnp.allclose(loss, ref, atol=1e-5, rtol=1e-4), (loss, ref)

    # Case 2: non-default temperature + batch that needs padding.
    B2, D2 = 10, 32
    emb2 = jax.random.normal(k3, (B2, D2), dtype=jnp.float32)
    lab2 = jax.random.randint(k4, (B2,), 0, 3, dtype=jnp.int32)
    loss2 = contrastive_loss(emb2, lab2, temperature=0.1)
    jax.block_until_ready(loss2)
    ref2 = _reference(emb2, lab2, 0.1)
    assert jnp.allclose(loss2, ref2, atol=1e-5, rtol=1e-4), (loss2, ref2)

    print("KERNEL_OK")
</pallas_src>

<mosaic_0001>
module attributes {stable_mosaic.version = 11 : i64} {
  func.func @kernel(%arg0: i32, %arg1: memref<128x32xf32, #tpu.memory_space<vmem>>, %arg2: memref<128x32xf32, #tpu.memory_space<vmem>>) attributes {dimension_semantics = [#tpu.dimension_semantics<parallel>], iteration_bounds = array<i64: 1>, scalar_prefetch = 0 : i64, scratch_operands = 0 : i64, tpu.core_type = #tpu.core_type<tc>, window_params = [{transform_indices = @transform_0, window_bounds = array<i64: 128, 32>}, {transform_indices = @transform_1, window_bounds = array<i64: 128, 32>}]} {
    %c0 = arith.constant 0 : index
    %c0_0 = arith.constant 0 : index
    %0 = vector.load %arg1[%c0, %c0_0] : memref<128x32xf32, #tpu.memory_space<vmem>>, vector<128x32xf32>
    %1 = arith.mulf %0, %0 : vector<128x32xf32>
    %cst = arith.constant dense<0.000000e+00> : vector<128xf32>
    %2 = vector.multi_reduction <add>, %1, %cst [1] : vector<128x32xf32> to vector<128xf32>
    %3 = vector.shape_cast %2 : vector<128xf32> to vector<128x1xf32>
    %cst_1 = arith.constant 1.000000e-24 : f32
    %4 = vector.broadcast %cst_1 : f32 to vector<128x1xf32>
    %5 = arith.maximumf %3, %4 : vector<128x1xf32>
    %6 = math.rsqrt %5 : vector<128x1xf32>
    %cst_2 = arith.constant 3.77964473 : f32
    %7 = vector.broadcast %cst_2 : f32 to vector<128x1xf32>
    %8 = arith.mulf %7, %6 : vector<128x1xf32>
    %9 = vector.broadcast %8 : vector<128x1xf32> to vector<128x32xf32>
    %10 = arith.mulf %0, %9 : vector<128x32xf32>
    %c0_3 = arith.constant 0 : index
    %c0_4 = arith.constant 0 : index
    %11 = vector.load %arg2[%c0_3, %c0_4] : memref<128x32xf32, #tpu.memory_space<vmem>>, vector<128x32xf32>
    tpu.vector_store %arg2[%c0_3, %c0_4], %10 {strides = array<i32>} : memref<128x32xf32, #tpu.memory_space<vmem>>, vector<128x32xf32>,
    return
  }
  func.func @transform_0(%arg0: i32) -> (i32, i32) {
    %c0_i32 = arith.constant 0 : i32
    %c0_i32_0 = arith.constant 0 : i32
    return %arg0, %c0_i32 : i32, i32
  }
  func.func @transform_1(%arg0: i32) -> (i32, i32) {
    %c0_i32 = arith.constant 0 : i32
    %c0_i32_0 = arith.constant 0 : i32
    return %arg0, %c0_i32 : i32, i32
  }
}

</mosaic_0001>

<bundles_post_ra>
// kernel: tpu_custom_call.1
= control target key start
LH: loop header
LB: loop body
LE: loop exit
PB: predicated region body
PF: predicated region fallthrough
CT: control target
= control target key end

     0   :  { %vm40_vm0 = vcmask 261120   ;;  %s423_s0 = inlined_call_operand.vmem [shape: f32[128,32], index: 0, kind: input, shape index: {}]   ;;  %s424_s1 = inlined_call_operand.vmem [shape: f32[128,32], index: 1, kind: output, shape index: {}]  }
   0x1   :  { %v218_v0 = vld [vmem:[%s423_s0 + $0x10] sm:$0xff]  ;;  %v223_v1 = vld [vmem:[%s423_s0] sm:$0xff]  ;;  %v228_v2 = vld [vmem:[%s423_s0 + $0x18] sm:$0xff] }
   0x2   :  { %v26_v3 = vmul.f32 %v218_v0, %v218_v0  ;;  %v24_v4 = vmul.f32 %v223_v1, %v223_v1  ;;  %v27_v5 = vmul.f32 %v228_v2, %v228_v2  ;;  %v239_v6 = vld [vmem:[%s423_s0 + $0x8] sm:$0xff]  ;;  %v251_v9 = vld [vmem:[%s423_s0 + $0x20] sm:$0xff]  ;;  %v264_v16 = vld [vmem:[%s423_s0 + $0x38] sm:$0xff] }
   0x3   :  { %v25_v7 = vmul.f32 %v239_v6, %v239_v6  ;;  %v246_v8 = vld [vmem:[%s423_s0 + $0x28] sm:$0xff]  ;;  %v28_v15 = vmul.f32 %v251_v9, %v251_v9  ;;  %v269_v17 = vld [vmem:[%s423_s0 + $0x30] sm:$0xff]  ;;  %v31_v20 = vmul.f32 %v264_v16, %v264_v16  ;;  %v285_v23 = vld [vmem:[%s423_s0 + $0x40] sm:$0xff] }
   0x4   :  { %v47_v10 = vsel %vm40_vm0, %v26_v3, 0.0  ;;  %v41_v11 = vsel %vm40_vm0, %v24_v4, 0.0  ;;  %v50_v12 = vsel %vm40_vm0, %v27_v5, 0.0  ;;  %v29_v14 = vmul.f32 %v246_v8, %v246_v8  ;;  %v280_v22 = vld [vmem:[%s423_s0 + $0x48] sm:$0xff]  ;;  %v296_v28 = vld [vmem:[%s423_s0 + $0x58] sm:$0xff]  ;;  %v301_v29 = vld [vmem:[%s423_s0 + $0x50] sm:$0xff] }
   0x5   :  { %48 = vadd.xlane.f32.xlu1 %v47_v10  ;;  %42 = vadd.xlane.f32.xlu0 %v41_v11  ;;  %v44_v13 = vsel %vm40_vm0, %v25_v7, 0.0  ;;  %v53_v19 = vsel %vm40_vm0, %v28_v15, 0.0  ;;  %v30_v21 = vmul.f32 %v269_v17, %v269_v17  ;;  %v62_v24 = vsel %vm40_vm0, %v31_v20, 0.0  ;;  %v312_v34 = vld [vmem:[%s423_s0 + $0x68] sm:$0xff]  ;;  %v317_v35 = vld [vmem:[%s423_s0 + $0x60] sm:$0xff]  ;;  %v328_v40 = vld [vmem:[%s423_s0 + $0x78] sm:$0xff] }
   0x6   :  { %v56_v18 = vsel %vm40_vm0, %v29_v14, 0.0  ;;  %v33_v26 = vmul.f32 %v280_v22, %v280_v22  ;;  %v32_v27 = vmul.f32 %v285_v23, %v285_v23  ;;  %v35_v32 = vmul.f32 %v296_v28, %v296_v28  ;;  %v333_v41 = vld [vmem:[%s423_s0 + $0x70] sm:$0xff] }
   0x7   :  { %v59_v25 = vsel %vm40_vm0, %v30_v21, 0.0  ;;  %v34_v33 = vmul.f32 %v301_v29, %v301_v29  ;;  %v37_v38 = vmul.f32 %v312_v34, %v312_v34  ;;  %v36_v39 = vmul.f32 %v317_v35, %v317_v35 }
   0x8   :  { %v68_v30 = vsel %vm40_vm0, %v33_v26, 0.0  ;;  %v65_v31 = vsel %vm40_vm0, %v32_v27, 0.0  ;;  %v74_v36 = vsel %vm40_vm0, %v35_v32, 0.0  ;;  %v39_v44 = vmul.f32 %v328_v40, %v328_v40 }
   0x9   :  { %51 = vadd.xlane.f32.xlu1 %v50_v12  ;;  %45 = vadd.xlane.f32.xlu0 %v44_v13  ;;  %v71_v37 = vsel %vm40_vm0, %v34_v33, 0.0  ;;  %v80_v42 = vsel %vm40_vm0, %v37_v38, 0.0  ;;  %v77_v43 = vsel %vm40_vm0, %v36_v39, 0.0  ;;  %v38_v45 = vmul.f32 %v333_v41, %v333_v41 }
   0xa   :  { %v86_v46 = vsel %vm40_vm0, %v39_v44, 0.0 }
   0xb   :  { %v83_v47 = vsel %vm40_vm0, %v38_v45, 0.0 }
   0xd   :  { %57 = vadd.xlane.f32.xlu1 %v56_v18  ;;  %54 = vadd.xlane.f32.xlu0 %v53_v19 }
  0x11   :  { %63 = vadd.xlane.f32.xlu1 %v62_v24  ;;  %60 = vadd.xlane.f32.xlu0 %v59_v25 }
  0x15   :  { %69 = vadd.xlane.f32.xlu1 %v68_v30  ;;  %66 = vadd.xlane.f32.xlu0 %v65_v31 }
  0x19   :  { %75 = vadd.xlane.f32.xlu1 %v74_v36  ;;  %72 = vadd.xlane.f32.xlu0 %v71_v37 }
  0x1d   :  { %81 = vadd.xlane.f32.xlu1 %v80_v42  ;;  %78 = vadd.xlane.f32.xlu0 %v77_v43 }
  0x21   :  { %87 = vadd.xlane.f32.xlu1 %v86_v46  ;;  %84 = vadd.xlane.f32.xlu0 %v83_v47 }
  0x8e   :  { %v49_v48 = vpop.xlane.xlu1 %48  ;;  %v43_v49 = vpop.xlane.xlu0 %42 }
  0x8f   :  { %v91_v50 = vmax.f32 %v49_v48, 1e-24  ;;  %v89_v51 = vmax.f32 %v43_v49, 1e-24 }
  0x91   :  { %173 = vrsqrt.f32 %v91_v50 }
  0x92   :  { %175 = vrsqrt.f32 %v89_v51  ;;  %v52_v52 = vpop.xlane.xlu1 %51  ;;  %v46_v53 = vpop.xlane.xlu0 %45 }
  0x93   :  { %v92_v54 = vmax.f32 %v52_v52, 1e-24  ;;  %v90_v55 = vmax.f32 %v46_v53, 1e-24 }
  0x95   :  { %177 = vrsqrt.f32 %v92_v54 }
  0x96   :  { %179 = vrsqrt.f32 %v90_v55  ;;  %v58_v56 = vpop.xlane.xlu1 %57  ;;  %v55_v57 = vpop.xlane.xlu0 %54 }
  0x97   :  { %v94_v58 = vmax.f32 %v58_v56, 1e-24  ;;  %v93_v59 = vmax.f32 %v55_v57, 1e-24 }
  0x99   :  { %181 = vrsqrt.f32 %v94_v58 }
  0x9a   :  { %183 = vrsqrt.f32 %v93_v59  ;;  %v64_v60 = vpop.xlane.xlu1 %63  ;;  %v61_v61 = vpop.xlane.xlu0 %60 }
  0x9b   :  { %v96_v62 = vmax.f32 %v64_v60, 1e-24  ;;  %v95_v63 = vmax.f32 %v61_v61, 1e-24 }
  0x9d   :  { %185 = vrsqrt.f32 %v96_v62 }
  0x9e   :  { %v174_v3 = vpop.eup %173  ;;  %187 = vrsqrt.f32 %v95_v63  ;;  %v70_v4 = vpop.xlane.xlu1 %69 }
  0x9f   :  { %v67_v5 = vpop.xlane.xlu0 %66  ;;  %v176_v7 = vpop.eup %175  ;;  %v123_v10 = vmul.f32 3.7796447, %v174_v3  ;;  %v98_v11 = vmax.f32 %v70_v4, 1e-24 }
  0xa0   :  { %v97_v12 = vmax.f32 %v67_v5, 1e-24  ;;  %v121_v13 = vmul.f32 3.7796447, %v176_v7 }
  0xa1   :  { %v139_v14 = vmul.f32 %v123_v10, %v218_v0  ;;  %189 = vrsqrt.f32 %v98_v11 }
  0xa2   :  { %v178_v15 = vpop.eup %177  ;;  %v137_v18 = vmul.f32 %v121_v13, %v223_v1  ;;  %191 = vrsqrt.f32 %v97_v12  ;;  %v76_v19 = vpop.xlane.xlu1 %75 }
  0xa3   :  { %v73_v20 = vpop.xlane.xlu0 %72  ;;  %v180_v21 = vpop.eup %179  ;;  %155 = vst.msk [vmem:[%s424_s1 + $0x10] sm:$0xff] %vm40_vm0, %v139_v14  ;;  %v124_v24 = vmul.f32 3.7796447, %v178_v15  ;;  %v100_v25 = vmax.f32 %v76_v19, 1e-24 }
  0xa4   :  { %v99_v26 = vmax.f32 %v73_v20, 1e-24  ;;  %153 = vst.msk [vmem:[%s424_s1] sm:$0xff] %vm40_vm0, %v137_v18  ;;  %v122_v0 = vmul.f32 3.7796447, %v180_v21 }
  0xa5   :  { %v140_v1 = vmul.f32 %v124_v24, %v228_v2  ;;  %193 = vrsqrt.f32 %v100_v25 }
  0xa6   :  { %v182_v27 = vpop.eup %181  ;;  %v138_v30 = vmul.f32 %v122_v0, %v239_v6  ;;  %195 = vrsqrt.f32 %v99_v26  ;;  %v82_v31 = vpop.xlane.xlu1 %81 }
  0xa7   :  { %v79_v32 = vpop.xlane.xlu0 %78  ;;  %v184_v33 = vpop.eup %183  ;;  %156 = vst.msk [vmem:[%s424_s1 + $0x18] sm:$0xff] %vm40_vm0, %v140_v1  ;;  %v126_v36 = vmul.f32 3.7796447, %v182_v27  ;;  %v102_v37 = vmax.f32 %v82_v31, 1e-24 }
  0xa8   :  { %v101_v38 = vmax.f32 %v79_v32, 1e-24  ;;  %154 = vst.msk [vmem:[%s424_s1 + $0x8] sm:$0xff] %vm40_vm0, %v138_v30  ;;  %v125_v2 = vmul.f32 3.7796447, %v184_v33 }
  0xa9   :  { %v142_v6 = vmul.f32 %v126_v36, %v246_v8  ;;  %197 = vrsqrt.f32 %v102_v37 }
  0xaa   :  { %v186_v39 = vpop.eup %185  ;;  %v141_v42 = vmul.f32 %v125_v2, %v251_v9  ;;  %199 = vrsqrt.f32 %v101_v38  ;;  %v88_v43 = vpop.xlane.xlu1 %87 }
  0xab   :  { %v85_v44 = vpop.xlane.xlu0 %84  ;;  %v188_v45 = vpop.eup %187  ;;  %158 = vst.msk [vmem:[%s424_s1 + $0x28] sm:$0xff] %vm40_vm0, %v142_v6  ;;  %v128_v46 = vmul.f32 3.7796447, %v186_v39  ;;  %v104_v47 = vmax.f32 %v88_v43, 1e-24 }
  0xac   :  { %v103_v48 = vmax.f32 %v85_v44, 1e-24  ;;  %157 = vst.msk [vmem:[%s424_s1 + $0x20] sm:$0xff] %vm40_vm0, %v141_v42  ;;  %v127_v8 = vmul.f32 3.7796447, %v188_v45 }
  0xad   :  { %v144_v9 = vmul.f32 %v128_v46, %v264_v16  ;;  %201 = vrsqrt.f32 %v104_v47 }
  0xae   :  { %v190_v49 = vpop.eup %189  ;;  %v143_v50 = vmul.f32 %v127_v8, %v269_v17  ;;  %203 = vrsqrt.f32 %v103_v48 }
  0xaf   :  { %v192_v51 = vpop.eup %191  ;;  %160 = vst.msk [vmem:[%s424_s1 + $0x38] sm:$0xff] %vm40_vm0, %v144_v9  ;;  %v130_v52 = vmul.f32 3.7796447, %v190_v49 }
  0xb0   :  { %159 = vst.msk [vmem:[%s424_s1 + $0x30] sm:$0xff] %vm40_vm0, %v143_v50  ;;  %v129_v53 = vmul.f32 3.7796447, %v192_v51 }
  0xb1   :  { %v146_v16 = vmul.f32 %v130_v52, %v280_v22 }
  0xb2   :  { %v194_v54 = vpop.eup %193  ;;  %v145_v55 = vmul.f32 %v129_v53, %v285_v23 }
  0xb3   :  { %v196_v17 = vpop.eup %195  ;;  %162 = vst.msk [vmem:[%s424_s1 + $0x48] sm:$0xff] %vm40_vm0, %v146_v16  ;;  %v132_v56 = vmul.f32 3.7796447, %v194_v54 }
  0xb4   :  { %161 = vst.msk [vmem:[%s424_s1 + $0x40] sm:$0xff] %vm40_vm0, %v145_v55  ;;  %v131_v57 = vmul.f32 3.7796447, %v196_v17 }
  0xb5   :  { %v148_v58 = vmul.f32 %v132_v56, %v296_v28 }
  0xb6   :  { %v198_v59 = vpop.eup %197  ;;  %v147_v22 = vmul.f32 %v131_v57, %v301_v29 }
  0xb7   :  { %v200_v60 = vpop.eup %199  ;;  %164 = vst.msk [vmem:[%s424_s1 + $0x58] sm:$0xff] %vm40_vm0, %v148_v58  ;;  %v134_v23 = vmul.f32 3.7796447, %v198_v59 }
  0xb8   :  { %163 = vst.msk [vmem:[%s424_s1 + $0x50] sm:$0xff] %vm40_vm0, %v147_v22  ;;  %v133_v61 = vmul.f32 3.7796447, %v200_v60 }
  0xb9   :  { %v150_v62 = vmul.f32 %v134_v23, %v312_v34 }
  0xba   :  { %v202_v63 = vpop.eup %201  ;;  %v149_v28 = vmul.f32 %v133_v61, %v317_v35 }
  0xbb   :  { %v204_v3 = vpop.eup %203  ;;  %166 = vst.msk [vmem:[%s424_s1 + $0x68] sm:$0xff] %vm40_vm0, %v150_v62  ;;  %v136_v29 = vmul.f32 3.7796447, %v202_v63 }
  0xbc   :  { %165 = vst.msk [vmem:[%s424_s1 + $0x60] sm:$0xff] %vm40_vm0, %v149_v28  ;;  %v135_v4 = vmul.f32 3.7796447, %v204_v3 }
  0xbd   :  { %v152_v5 = vmul.f32 %v136_v29, %v328_v40 }
  0xbe   :  { %v151_v34 = vmul.f32 %v135_v4, %v333_v41 }
  0xbf   :  { %168 = vst.msk [vmem:[%s424_s1 + $0x78] sm:$0xff] %vm40_vm0, %v152_v5 }
  0xc0   :  { %167 = vst.msk [vmem:[%s424_s1 + $0x70] sm:$0xff] %vm40_vm0, %v151_v34 }

</bundles_post_ra>
